<compile_context>
chip_gen: v7x
topology: tpu7x:2x2x1
jax: 0.10.0
libtpu: 0.0.40
codegen_flags: <defaults>
</compile_context>

<pallas_src>
import functools
import math

import jax
import jax.numpy as jnp
from jax.experimental import pallas as pl
from jax.experimental.pallas import tpu as pltpu

_REANCHOR = 3            # recompute exact sin/cos every 3 octaves (bounds drift << 1e-5)
_SUBLANE = 8
_LANE = 128
_MAX_TILE_N = 4096       # ~85%+ of HBM roofline is reached well below this
_VMEM_LIMIT = 32 * 1024 * 1024


def _round_up(v, m):
    return (v + m - 1) // m * m


def _encoding_parts(x, num_freqs, include_input):
    """x: (D, tn) f32 lane-dense tile -> list of (D, tn) f32 parts in output order."""
    parts = []
    if include_input:
        parts.append(x)
    s = c = None
    for i in range(num_freqs):           # Python loop -> fully unrolled at trace time
        if i % _REANCHOR == 0:
            xf = x if i == 0 else jnp.float32(2.0 ** i) * x
            s = jnp.sin(xf)              # exact EUP evaluation at anchor octaves
            c = jnp.cos(xf)
        else:
            # Double-angle recurrence (~5 cheap VPU ops instead of 2 transcendentals).
            # (c - s) * (c + s) is better conditioned than c*c - s*s near 45 deg.
            s, c = 2.0 * s * c, (c - s) * (c + s)
        parts.append(s)
        parts.append(c)
    return parts


def _fused_kernel(x_ref, o_ref, *, num_freqs, include_input):
    # x_ref: (D, tn)  -- features on sublanes, points on lanes (lane-dense compute).
    # o_ref: (tn, K*D) -- final PyTorch layout tile, written directly (no wrapper transpose).
    x = x_ref[...].astype(jnp.float32)
    tn = x.shape[1]

    parts = _encoding_parts(x, num_freqs, include_input)
    slab = jnp.concatenate(parts, axis=0) if len(parts) > 1 else parts[0]   # (K*D, tn)
    rows = slab.shape[0]
    pad = _round_up(rows, _SUBLANE) - rows
    if pad:
        # Keep the transpose source sublane-aligned; pad rows are dropped below.
        slab = jnp.concatenate([slab, jnp.zeros((pad, tn), jnp.float32)], axis=0)

    slab_t = slab.T                      # XLU transpose: (rows_pad, tn) -> (tn, rows_pad)
    o_ref[...] = slab_t[:, :rows].astype(o_ref.dtype)


def _slab_kernel(x_ref, o_ref, *, num_freqs, include_input):
    # Fallback layout: o_ref (K, D, tn) lane-dense parts; wrapper does the transpose.
    x = x_ref[...].astype(jnp.float32)
    parts = _encoding_parts(x, num_freqs, include_input)
    for k, p in enumerate(parts):
        o_ref[k] = p.astype(o_ref.dtype)


def _per_point_vmem_bytes(d, out_d, in_bytes, out_bytes):
    # Double-buffered input/output blocks + f32 compute temporaries, per point column,
    # accounting for sublane/lane padding of the VMEM tiles.
    in_col = _round_up(d, _SUBLANE) * in_bytes
    out_col = _round_up(out_d, _LANE) * out_bytes       # (tn, out_d) block is lane-padded
    tmp_col = _round_up(out_d, _LANE) * 4 + 3 * _round_up(out_d, _SUBLANE) * 4
    return 2 * in_col + 2 * out_col + tmp_col


def _choose_tile_n(n, per_col, budget):
    tn_budget = max(_LANE, (budget // per_col) // _LANE * _LANE)
    # Aim for >=16 grid steps when N is large (>=8 per TensorCore on dual-core parts)
    # so the double-buffered pipeline actually overlaps DMA with compute.
    tn_steps = max(2 * _LANE, _round_up(pl.cdiv(n, 16), _LANE))
    return int(max(_LANE, min(tn_budget, tn_steps, _MAX_TILE_N)))


def positional_encoding(x, num_freqs, include_input=True, *, out_dtype=None,
                        vmem_budget_bytes=16 * 1024 * 1024, layout="auto"):
    """x: array of shape (..., D). Returns (..., D*(include_input + 2*num_freqs))."""
    orig_shape = x.shape
    D = orig_shape[-1]
    N = math.prod(orig_shape[:-1])
    K = (1 if include_input else 0) + 2 * num_freqs
    assert K > 0, "need include_input or num_freqs > 0"
    out_d = K * D
    out_dtype = x.dtype if out_dtype is None else jnp.dtype(out_dtype)
    in_bytes = jnp.dtype(x.dtype).itemsize
    out_bytes = jnp.dtype(out_dtype).itemsize

    # Lane-dense (feature-major) input view; small (12 B/point) relative to the output.
    xt = x.reshape(N, D).T                               # (D, N)

    budget = min(vmem_budget_bytes, 24 * 1024 * 1024)    # stay consistent with _VMEM_LIMIT
    per_col = _per_point_vmem_bytes(D, out_d, in_bytes, out_bytes)
    tn = _choose_tile_n(N, per_col, budget)
    grid = (pl.cdiv(N, tn),)                             # ragged N: final block is masked

    n_anchor = -(-num_freqs // _REANCHOR) if num_freqs > 0 else 0
    cost = pl.CostEstimate(
        flops=int(N * D * (1 + 6 * num_freqs)),
        transcendentals=int(2 * N * D * n_anchor),
        bytes_accessed=int(N * D * in_bytes + N * out_d * out_bytes),
    )
    cparams = pltpu.CompilerParams(
        dimension_semantics=("parallel",),
        vmem_limit_bytes=_VMEM_LIMIT,
    )

    def run_fused():
        f = pl.pallas_call(
            functools.partial(_fused_kernel, num_freqs=num_freqs,
                              include_input=include_input),
            out_shape=jax.ShapeDtypeStruct((N, out_d), out_dtype),
            grid_spec=pltpu.PrefetchScalarGridSpec(
                num_scalar_prefetch=0,
                grid=grid,
                in_specs=[pl.BlockSpec((D, tn), lambda i: (0, i))],
                out_specs=pl.BlockSpec((tn, out_d), lambda i: (i, 0)),
            ),
            compiler_params=cparams,
            cost_estimate=cost,
        )
        return f(xt)

    def run_slab():
        f = pl.pallas_call(
            functools.partial(_slab_kernel, num_freqs=num_freqs,
                              include_input=include_input),
            out_shape=jax.ShapeDtypeStruct((K, D, N), out_dtype),
            grid_spec=pltpu.PrefetchScalarGridSpec(
                num_scalar_prefetch=0,
                grid=grid,
                in_specs=[pl.BlockSpec((D, tn), lambda i: (0, i))],
                out_specs=pl.BlockSpec((K, D, tn), lambda i: (0, 0, i)),
            ),
            compiler_params=cparams,
            cost_estimate=cost,
        )
        out3 = f(xt)
        # Layout plumbing back to (N, K*D): out3[k, d, n] == part_k[n, d].
        return jnp.transpose(out3, (2, 0, 1)).reshape(N, out_d)

    if layout == "fused":
        out2 = run_fused()
    elif layout == "slab":
        out2 = run_slab()
    else:
        # "auto": prefer the fused in-kernel layout (no XLA output transpose);
        # fall back if this Mosaic build rejects the sublane concat / tile transpose.
        try:
            out2 = run_fused()
        except Exception:
            out2 = run_slab()

    return out2.reshape(*orig_shape[:-1], out_d)


def _reference(x, num_freqs, include_input=True):
    parts = []
    if include_input:
        parts.append(x)
    for i in range(num_freqs):
        freq = 2.0 ** i
        parts.append(jnp.sin(freq * x))
        parts.append(jnp.cos(freq * x))
    return jnp.concatenate(parts, axis=-1)


if __name__ == "__main__":
    key = jax.random.PRNGKey(0)
    k1, k2 = jax.random.split(key)

    # Example 1: typical NeRF-style shapes (batch of rays, D=3 coords, L=4 bands).
    B, P, D = 2, 1024, 3
    L = 4
    x = jax.random.normal(k1, (B, P, D), dtype=jnp.float32)
    out = jax.block_until_ready(positional_encoding(x, L, include_input=True))
    ref = _reference(x, L, include_input=True)
    assert out.shape == (B, P, D * (1 + 2 * L)), out.shape
    assert jnp.allclose(out, ref, atol=1e-5, rtol=1e-5), float(
        jnp.max(jnp.abs(out - ref))
    )

    # Example 2: ragged N (not a multiple of the tile) exercises the masked final
    # block path; also tests include_input=False.
    x2 = jax.random.normal(k2, (5, 97, D), dtype=jnp.float32)
    out2 = jax.block_until_ready(positional_encoding(x2, 3, include_input=False))
    ref2 = _reference(x2, 3, include_input=False)
    assert out2.shape == (5, 97, D * 2 * 3), out2.shape
    assert jnp.allclose(out2, ref2, atol=1e-5, rtol=1e-5), float(
        jnp.max(jnp.abs(out2 - ref2))
    )

    print("KERNEL_OK")
</pallas_src>

<mosaic_0001>
module attributes {stable_mosaic.version = 11 : i64} {
  func.func @_fused_kernel(%arg0: i32, %arg1: memref<3x256xf32, #tpu.memory_space<vmem>>, %arg2: memref<256x27xf32, #tpu.memory_space<vmem>>) attributes {dimension_semantics = [#tpu.dimension_semantics<parallel>], iteration_bounds = array<i64: 8>, scalar_prefetch = 0 : i64, scratch_operands = 0 : i64, tpu.core_type = #tpu.core_type<tc>, window_params = [{transform_indices = @transform_0, window_bounds = array<i64: 3, 256>}, {transform_indices = @transform_1, window_bounds = array<i64: 256, 27>}]} {
    %c0 = arith.constant 0 : index
    %c0_0 = arith.constant 0 : index
    %0 = vector.load %arg1[%c0, %c0_0] : memref<3x256xf32, #tpu.memory_space<vmem>>, vector<3x256xf32>
    %1 = math.sin %0 : vector<3x256xf32>
    %2 = math.cos %0 : vector<3x256xf32>
    %cst = arith.constant 2.000000e+00 : f32
    %3 = vector.broadcast %cst : f32 to vector<3x256xf32>
    %4 = arith.mulf %3, %1 : vector<3x256xf32>
    %5 = arith.mulf %4, %2 : vector<3x256xf32>
    %6 = arith.subf %2, %1 : vector<3x256xf32>
    %7 = arith.addf %2, %1 : vector<3x256xf32>
    %8 = arith.mulf %6, %7 : vector<3x256xf32>
    %cst_1 = arith.constant 2.000000e+00 : f32
    %9 = vector.broadcast %cst_1 : f32 to vector<3x256xf32>
    %10 = arith.mulf %9, %5 : vector<3x256xf32>
    %11 = arith.mulf %10, %8 : vector<3x256xf32>
    %12 = arith.subf %8, %5 : vector<3x256xf32>
    %13 = arith.addf %8, %5 : vector<3x256xf32>
    %14 = arith.mulf %12, %13 : vector<3x256xf32>
    %cst_2 = arith.constant 8.000000e+00 : f32
    %15 = vector.broadcast %cst_2 : f32 to vector<3x256xf32>
    %16 = arith.mulf %15, %0 : vector<3x256xf32>
    %17 = math.sin %16 : vector<3x256xf32>
    %18 = math.cos %16 : vector<3x256xf32>
    %19 = tpu.concatenate %0, %1, %2, %5, %8, %11, %14, %17, %18 in 0 : vector<3x256xf32>, vector<3x256xf32>, vector<3x256xf32>, vector<3x256xf32>, vector<3x256xf32>, vector<3x256xf32>, vector<3x256xf32>, vector<3x256xf32>, vector<3x256xf32> -> vector<27x256xf32>
    %cst_3 = arith.constant 0.000000e+00 : f32
    %20 = vector.broadcast %cst_3 : f32 to vector<5x256xf32>
    %21 = tpu.concatenate %19, %20 in 0 : vector<27x256xf32>, vector<5x256xf32> -> vector<32x256xf32>
    %22 = tpu.transpose %21, [1, 0] : vector<32x256xf32> -> vector<256x32xf32>
    %23 = vector.extract_strided_slice %22 {offsets = [0, 0], sizes = [256, 27], strides = [1, 1]} : vector<256x32xf32> to vector<256x27xf32>
    %c0_4 = arith.constant 0 : index
    %c0_5 = arith.constant 0 : index
    %24 = vector.load %arg2[%c0_4, %c0_5] : memref<256x27xf32, #tpu.memory_space<vmem>>, vector<256x27xf32>
    tpu.vector_store %arg2[%c0_4, %c0_5], %23 {strides = array<i32>} : memref<256x27xf32, #tpu.memory_space<vmem>>, vector<256x27xf32>,
    return
  }
  func.func @transform_0(%arg0: i32) -> (i32, i32) {
    %c0_i32 = arith.constant 0 : i32
    %c0_i32_0 = arith.constant 0 : i32
    return %c0_i32, %arg0 : i32, i32
  }
  func.func @transform_1(%arg0: i32) -> (i32, i32) {
    %c0_i32 = arith.constant 0 : i32
    %c0_i32_0 = arith.constant 0 : i32
    return %arg0, %c0_i32 : i32, i32
  }
}

module attributes {stable_mosaic.version = 11 : i64} {
  func.func @_slab_kernel(%arg0: i32, %arg1: memref<3x256xf32, #tpu.memory_space<vmem>>, %arg2: memref<9x3x256xf32, #tpu.memory_space<vmem>>) attributes {dimension_semantics = [#tpu.dimension_semantics<parallel>], iteration_bounds = array<i64: 8>, scalar_prefetch = 0 : i64, scratch_operands = 0 : i64, tpu.core_type = #tpu.core_type<tc>, window_params = [{transform_indices = @transform_0, window_bounds = array<i64: 3, 256>}, {transform_indices = @transform_1, window_bounds = array<i64: 9, 3, 256>}]} {
    %c0 = arith.constant 0 : index
    %c0_0 = arith.constant 0 : index
    %0 = vector.load %arg1[%c0, %c0_0] : memref<3x256xf32, #tpu.memory_space<vmem>>, vector<3x256xf32>
    %1 = math.sin %0 : vector<3x256xf32>
    %2 = math.cos %0 : vector<3x256xf32>
    %cst = arith.constant 2.000000e+00 : f32
    %3 = vector.broadcast %cst : f32 to vector<3x256xf32>
    %4 = arith.mulf %3, %1 : vector<3x256xf32>
    %5 = arith.mulf %4, %2 : vector<3x256xf32>
    %6 = arith.subf %2, %1 : vector<3x256xf32>
    %7 = arith.addf %2, %1 : vector<3x256xf32>
    %8 = arith.mulf %6, %7 : vector<3x256xf32>
    %cst_1 = arith.constant 2.000000e+00 : f32
    %9 = vector.broadcast %cst_1 : f32 to vector<3x256xf32>
    %10 = arith.mulf %9, %5 : vector<3x256xf32>
    %11 = arith.mulf %10, %8 : vector<3x256xf32>
    %12 = arith.subf %8, %5 : vector<3x256xf32>
    %13 = arith.addf %8, %5 : vector<3x256xf32>
    %14 = arith.mulf %12, %13 : vector<3x256xf32>
    %cst_2 = arith.constant 8.000000e+00 : f32
    %15 = vector.broadcast %cst_2 : f32 to vector<3x256xf32>
    %16 = arith.mulf %15, %0 : vector<3x256xf32>
    %17 = math.sin %16 : vector<3x256xf32>
    %18 = math.cos %16 : vector<3x256xf32>
    %c0_3 = arith.constant 0 : index
    %c0_4 = arith.constant 0 : index
    %c0_5 = arith.constant 0 : index
    %19 = vector.load %arg2[%c0_3, %c0_4, %c0_5] : memref<9x3x256xf32, #tpu.memory_space<vmem>>, vector<1x3x256xf32>
    %20 = vector.shape_cast %19 : vector<1x3x256xf32> to vector<3x256xf32>
    %21 = vector.shape_cast %0 : vector<3x256xf32> to vector<1x3x256xf32>
    tpu.vector_store %arg2[%c0_3, %c0_4, %c0_5], %21 {strides = array<i32>} : memref<9x3x256xf32, #tpu.memory_space<vmem>>, vector<1x3x256xf32>,
    %c1 = arith.constant 1 : index
    %c0_6 = arith.constant 0 : index
    %c0_7 = arith.constant 0 : index
    %22 = vector.load %arg2[%c1, %c0_6, %c0_7] : memref<9x3x256xf32, #tpu.memory_space<vmem>>, vector<1x3x256xf32>
    %23 = vector.shape_cast %22 : vector<1x3x256xf32> to vector<3x256xf32>
    %24 = vector.shape_cast %1 : vector<3x256xf32> to vector<1x3x256xf32>
    tpu.vector_store %arg2[%c1, %c0_6, %c0_7], %24 {strides = array<i32>} : memref<9x3x256xf32, #tpu.memory_space<vmem>>, vector<1x3x256xf32>,
    %c2 = arith.constant 2 : index
    %c0_8 = arith.constant 0 : index
    %c0_9 = arith.constant 0 : index
    %25 = vector.load %arg2[%c2, %c0_8, %c0_9] : memref<9x3x256xf32, #tpu.memory_space<vmem>>, vector<1x3x256xf32>
    %26 = vector.shape_cast %25 : vector<1x3x256xf32> to vector<3x256xf32>
    %27 = vector.shape_cast %2 : vector<3x256xf32> to vector<1x3x256xf32>
    tpu.vector_store %arg2[%c2, %c0_8, %c0_9], %27 {strides = array<i32>} : memref<9x3x256xf32, #tpu.memory_space<vmem>>, vector<1x3x256xf32>,
    %c3 = arith.constant 3 : index
    %c0_10 = arith.constant 0 : index
    %c0_11 = arith.constant 0 : index
    %28 = vector.load %arg2[%c3, %c0_10, %c0_11] : memref<9x3x256xf32, #tpu.memory_space<vmem>>, vector<1x3x256xf32>
    %29 = vector.shape_cast %28 : vector<1x3x256xf32> to vector<3x256xf32>
    %30 = vector.shape_cast %5 : vector<3x256xf32> to vector<1x3x256xf32>
    tpu.vector_store %arg2[%c3, %c0_10, %c0_11], %30 {strides = array<i32>} : memref<9x3x256xf32, #tpu.memory_space<vmem>>, vector<1x3x256xf32>,
    %c4 = arith.constant 4 : index
    %c0_12 = arith.constant 0 : index
    %c0_13 = arith.constant 0 : index
    %31 = vector.load %arg2[%c4, %c0_12, %c0_13] : memref<9x3x256xf32, #tpu.memory_space<vmem>>, vector<1x3x256xf32>
    %32 = vector.shape_cast %31 : vector<1x3x256xf32> to vector<3x256xf32>
    %33 = vector.shape_cast %8 : vector<3x256xf32> to vector<1x3x256xf32>
    tpu.vector_store %arg2[%c4, %c0_12, %c0_13], %33 {strides = array<i32>} : memref<9x3x256xf32, #tpu.memory_space<vmem>>, vector<1x3x256xf32>,
    %c5 = arith.constant 5 : index
    %c0_14 = arith.constant 0 : index
    %c0_15 = arith.constant 0 : index
    %34 = vector.load %arg2[%c5, %c0_14, %c0_15] : memref<9x3x256xf32, #tpu.memory_space<vmem>>, vector<1x3x256xf32>
    %35 = vector.shape_cast %34 : vector<1x3x256xf32> to vector<3x256xf32>
    %36 = vector.shape_cast %11 : vector<3x256xf32> to vector<1x3x256xf32>
    tpu.vector_store %arg2[%c5, %c0_14, %c0_15], %36 {strides = array<i32>} : memref<9x3x256xf32, #tpu.memory_space<vmem>>, vector<1x3x256xf32>,
    %c6 = arith.constant 6 : index
    %c0_16 = arith.constant 0 : index
    %c0_17 = arith.constant 0 : index
    %37 = vector.load %arg2[%c6, %c0_16, %c0_17] : memref<9x3x256xf32, #tpu.memory_space<vmem>>, vector<1x3x256xf32>
    %38 = vector.shape_cast %37 : vector<1x3x256xf32> to vector<3x256xf32>
    %39 = vector.shape_cast %14 : vector<3x256xf32> to vector<1x3x256xf32>
    tpu.vector_store %arg2[%c6, %c0_16, %c0_17], %39 {strides = array<i32>} : memref<9x3x256xf32, #tpu.memory_space<vmem>>, vector<1x3x256xf32>,
    %c7 = arith.constant 7 : index
    %c0_18 = arith.constant 0 : index
    %c0_19 = arith.constant 0 : index
    %40 = vector.load %arg2[%c7, %c0_18, %c0_19] : memref<9x3x256xf32, #tpu.memory_space<vmem>>, vector<1x3x256xf32>
    %41 = vector.shape_cast %40 : vector<1x3x256xf32> to vector<3x256xf32>
    %42 = vector.shape_cast %17 : vector<3x256xf32> to vector<1x3x256xf32>
    tpu.vector_store %arg2[%c7, %c0_18, %c0_19], %42 {strides = array<i32>} : memref<9x3x256xf32, #tpu.memory_space<vmem>>, vector<1x3x256xf32>,
    %c8 = arith.constant 8 : index
    %c0_20 = arith.constant 0 : index
    %c0_21 = arith.constant 0 : index
    %43 = vector.load %arg2[%c8, %c0_20, %c0_21] : memref<9x3x256xf32, #tpu.memory_space<vmem>>, vector<1x3x256xf32>
    %44 = vector.shape_cast %43 : vector<1x3x256xf32> to vector<3x256xf32>
    %45 = vector.shape_cast %18 : vector<3x256xf32> to vector<1x3x256xf32>
    tpu.vector_store %arg2[%c8, %c0_20, %c0_21], %45 {strides = array<i32>} : memref<9x3x256xf32, #tpu.memory_space<vmem>>, vector<1x3x256xf32>,
    return
  }
  func.func @transform_0(%arg0: i32) -> (i32, i32) {
    %c0_i32 = arith.constant 0 : i32
    %c0_i32_0 = arith.constant 0 : i32
    return %c0_i32, %arg0 : i32, i32
  }
  func.func @transform_1(%arg0: i32) -> (i32, i32, i32) {
    %c0_i32 = arith.constant 0 : i32
    %c0_i32_0 = arith.constant 0 : i32
    %c0_i32_1 = arith.constant 0 : i32
    return %c0_i32, %c0_i32_0, %arg0 : i32, i32, i32
  }
}

</mosaic_0001>

<bundles_post_ra>
// kernel: tpu_custom_call.1
= control target key start
LH: loop header
LB: loop body
LE: loop exit
PB: predicated region body
PF: predicated region fallthrough
CT: control target
= control target key end

     0   :  { %6 = vsyncpa [#allocation3], 0  ;;  %s1248_s0 = inlined_call_operand.hbm [shape: f32[3,2048], index: 0, kind: input, shape index: {}]   ;;  %s1249_s1 = inlined_call_operand.vmem [shape: f32[2048,27], index: 1, kind: output, shape index: {}]  }
   0x1   :  { %8 = vsyncpa [#allocation3 + $0x1], 0  ;;  %s971_s6 = smov 0   ;;  %s973_s7 = smov 0  }
   0x2   :  { %s975_s8 = smov 0   ;;  %s977_s9 = smov 0  }
   0x3 LB: > { %s795_s10 = sadd.s32 4294967295, %s952_s9   ;;  %s991_s11 = sadd.s32 1, %s952_s9   ;;  %s952_s9 = sphi %s977_s9, %s1257_s9   ;;  %s948_s8 = sphi %s975_s8, %s1256_s8   ;;  %s944_s7 = sphi %s973_s7, %s1255_s7   ;;  %s940_s6 = sphi %s971_s6, %s1254_s6  }
   0x4   : > { %s18_s12 = ssub.s32 %s952_s9, %s991_s11  ;;  %s21_s13 = sadd.s32 1, %s948_s8 }
   0x5   : > { %p19_p0 = scmp.eq.s32.totalorder %s18_s12, 0  ;;  %p28_p1 = scmp.ne.s32.totalorder %s948_s8, %s944_s7 }
   0x6   : > { %p29_p2 = scmp.eq.s32.totalorder %s952_s9, 0  ;;  %p34_p3 = scmp.ne.s32.totalorder %s944_s7, %s940_s6 }
   0x7   : > { %s1001_s14 = scalar_select %p19_p0, %s948_s8, %s21_s13  }
   0x8   : > { %p30_p4 = por %p29_p2, %p28_p1  ;;  %p35_p5 = scmp.eq.s32.totalorder %s795_s10, 0 }
   0x9   : > { %p839_p6 = scmp.lt.s32.totalorder %s952_s9, 8  ;;  %s84_s16 = sand.u32 1, %s948_s8  }
   0xa   : > { %p1006_p7 = por %p35_p5, %p34_p3  ;;  %s799_s17 = sshll.u32 %s84_s16, 3 }
   0xb   : > { %s824_s18 = sshll.u32 %s952_s9, 7  ;;  %s88_s22 = scalar_lea.vmem [#allocation2], %s799_s17 }
   0xc   : > { %s1015_s21 = scalar_lea.hbm %s1248_s0, %s824_s18  ;;  %s96_s23 = sshll.u32 %s88_s22, 4  ;;  %s1017_s23 = int_to_ptr.vmem [resolvable:$true] %s96_s23 }
   0xd   : > { %p1019_p8 = pnand %p839_p6, %p30_p4  ;;  %s85_s25 = scalar_lea.sflag [#allocation3], %s84_s16 }
   0xe   : > { %s888_s26 = scalar_lea.hbm %s1015_s21, 128  ;;  %s893_s29 = scalar_lea.hbm %s1248_s0, 1024 }
   0xf   : > { %p889_p11 = scmp.ne.s32.totalorder %s1015_s21, %s888_s26  ;;  %p890_p12 = pneg %p1019_p8 }
  0x10   : > { %p894_p1 = scmp.lt.u32.totalorder %s1015_s21, %s1248_s0  ;;  %p895_p2 = scmp.lt.u32.totalorder %s893_s29, %s888_s26 }
  0x11   : > { %p891_p13 = pnand %p890_p12, %p889_p11  ;;  %p897_p4 = scmp.lt.u32.totalorder %s888_s26, %s1015_s21 }
  0x12   : > { %p896_p3 = por %p895_p2, %p894_p1 }
  0x13   : > { %p892_p0 = pneg %p891_p13 }
  0x14   : > { %p898_p5 = por %p897_p4, %p896_p3 }
  0x16   : > { %p899_p6 = pnand %p898_p5, %p892_p0 }
  0x18   : > { %902 = shalt.err (!%p899_p6)
}
  0x19   : > { %s903_s3 = scalar_lea.vmem %s1017_s23, 128  ;;  %s954_s4 = smov [#allocation2]  }
  0x1a   : > { %p904_p11 = scmp.ne.s32.totalorder %s1017_s23, %s903_s3  ;;  %s908_s5 = sshll.u32 %s954_s4, 4  ;;  %s909_s5 = int_to_ptr.vmem [resolvable:$false] %s908_s5 }
  0x1b   : > { %s910_s6 = scalar_lea.vmem %s909_s5, 256  ;;  %p911_p10 = scmp.lt.s32.totalorder %s1017_s23, %s909_s5 }
  0x1c   : > { %p906_p13 = pnand %p904_p11, %p890_p12  ;;  %p912_p1 = scmp.lt.s32.totalorder %s910_s6, %s903_s3 }
  0x1e   : > { %p907_p9 = pneg %p906_p13  ;;  %p913_p2 = por %p912_p1, %p911_p10 }
  0x20   : > { %p914_p3 = pnand %p913_p2, %p907_p9 }
  0x22   : > { %917 = shalt.err (!%p914_p3)
}
  0x23   : > { %838 = dma.hbm_to_vmem [thread:$0]  (!%p1019_p8), %s1015_s21, 128, %s1017_s23, %s85_s25  }
  0x24   : > { %p1252_p0 = scmp.lt.s32.totalorder %s952_s9, 9  ;;  %p1253_p4 = scmp.ge.s32.totalorder %s952_s9, 1 }
  0x26   : > { %p102_p12 = pnand %p1253_p4, %p1252_p0 }
  0x27   : > { %s107_s12 = sand.u32 (!%p102_p12), 1, %s944_s7  }
  0x28   : > { %105 = sbr.rel (%p102_p12) target bundleno = 330 (0x14a), region = 24  ;;  %s803_s13 = sshll.u32 (!%p102_p12), %s107_s12, 3 }
  0x29   : > { %s108_s16 = scalar_lea.sflag (!%p102_p12), [#allocation3], %s107_s12  ;;  %s111_s17 = scalar_lea.vmem (!%p102_p12), [#allocation2], %s803_s13 }
  0x2f   : > { %935 = dma.done.wait (%p1006_p7), %s108_s16, 128  }
  0x30   : > { %937 = vsyncadd (%p1006_p7), %s108_s16, 4294967168  ;;  %v1059_v0 = vld [vmem:[%s111_s17] sm:$0x77]  ;;  %v955_v21 = vmov 683565275   ;;  %s804_s15 = sshll.u32 %s795_s10, 5 }
  0x31   : > { %v138_v1 = vand.u32 2147483647, %v1059_v0  ;;  %v141_v2 = vand.u32 2139095040, %v1059_v0  ;;  %v1064_v3 = vmul.f32 8.0, %v1059_v0  ;;  %v956_v23 = vmov 2475754826  }
  0x32   : > { %v957_v25 = vmov 2131351028   ;;  %v958_v27 = vmov 2102212464   ;;  %v959_v29 = vmov 920167782  }
  0x33   : > { %v142_v4 = vshrl.u32 %v141_v2, 23  ;;  %v145_v5 = vand.u32 8388607, %v138_v1  ;;  %v356_v6 = vand.u32 2147483647, %v1064_v3  ;;  %v359_v7 = vand.u32 2139095040, %v1064_v3 }
  0x34   : > { %v960_v36 = vmov 1326507024   ;;  %vm140_vm14 = vcmp.lt.s32.totalorder %v1059_v0, 0  ;;  %vm139_vm15 = vcmp.le.f32.partialorder %v138_v1, 0.7853982  ;;  %p132_p7 = scmp.lt.s32.totalorder %s804_s15, 255 }
  0x35   : > { %v806_v8 = vadd.s32 4294967169, %v142_v4  ;;  %v360_v9 = vshrl.u32 %v359_v7, 23  ;;  %v146_v11 = vor.u32 8388608, %v145_v5  ;;  %v1072_v13 = vand.u32 8388607, %v356_v6 }
  0x36   : > { %s1259_s15 = smov (!%p132_p7, %s804_s15), 255 }
  0x37   : > { %v148_v10 = vadd.s32 1, %v806_v8  ;;  %v814_v12 = vadd.s32 4294967169, %v360_v9  ;;  %v1074_v18 = vshll.u32 %v146_v11, 8  ;;  %v364_v19 = vor.u32 8388608, %v1072_v13  ;;  %s805_s18 = sshll.u32 %s1259_s15, 3 }
  0x38   : > { %s1169_s21 = scalar_lea.vmem %s1249_s1, %s805_s18 }
  0x39   : > { %vm149_vm0 = vcmp.gt.s32.totalorder %v148_v10, 0  ;;  %v366_v15 = vadd.s32 1, %v814_v12 }
  0x3a   : > { %v150_v14 = vsel %vm149_vm0, %v148_v10, 0  ;;  %vm358_vm0 = vcmp.lt.s32.totalorder %v1064_v3, 0 }
  0x3b   : > { %v151_v16 = vshrl.u32 %v150_v14, 5  ;;  %v152_v17 = vand.u32 31, %v150_v14  ;;  %vm367_vm1 = vcmp.gt.s32.totalorder %v366_v15, 0 }
  0x3c   : > { %v368_v41 = vsel %vm367_vm1, %v366_v15, 0  ;;  %vm357_vm1 = vcmp.le.f32.partialorder %v356_v6, 0.7853982 }
  0x3d   : > { %v153_v20 = vsub.s32 32, %v152_v17  ;;  %v155_v22 = vshll.u32 %v955_v21, %v152_v17  ;;  %v158_v24 = vshll.u32 %v956_v23, %v152_v17  ;;  %v161_v26 = vshll.u32 %v957_v25, %v152_v17 }
  0x3e   : > { %v164_v28 = vshll.u32 %v958_v27, %v152_v17  ;;  %v167_v30 = vshll.u32 %v959_v29, %v152_v17  ;;  %vm170_vm2 = vcmp.lt.s32.totalorder %v151_v16, 1  ;;  %vm171_vm3 = vcmp.lt.s32.totalorder %v151_v16, 2 }
  0x3f   : > { %v154_v31 = vshrl.u32 %v955_v21, %v153_v20  ;;  %v156_v32 = vshrl.u32 %v956_v23, %v153_v20  ;;  %v159_v33 = vshrl.u32 %v957_v25, %v153_v20  ;;  %v162_v34 = vshrl.u32 %v958_v27, %v153_v20 }
  0x40   : > { %v165_v35 = vshrl.u32 %v959_v29, %v153_v20  ;;  %v168_v37 = vshrl.u32 %v960_v36, %v153_v20  ;;  %vm172_vm4 = vcmp.lt.s32.totalorder %v151_v16, 3  ;;  %vm173_vm5 = vcmp.lt.s32.totalorder %v151_v16, 4 }
  0x41   : > { %v157_v38 = vor.u32 %v156_v32, %v155_v22  ;;  %v160_v39 = vor.u32 %v159_v33, %v158_v24  ;;  %v163_v40 = vor.u32 %v162_v34, %v161_v26  ;;  %v369_v44 = vshrl.u32 %v368_v41, 5 }
  0x42   : > { %v166_v42 = vor.u32 %v165_v35, %v164_v28  ;;  %v169_v43 = vor.u32 %v168_v37, %v167_v30  ;;  %v370_v45 = vand.u32 31, %v368_v41 }
  0x43   : > { %v174_v46 = vsel %vm170_vm2, %v154_v31, %v157_v38  ;;  %v175_v47 = vsel %vm173_vm5, %v163_v40, 2102212464  ;;  %v178_v48 = vsel %vm170_vm2, %v157_v38, %v160_v39  ;;  %v182_v49 = vsel %vm170_vm2, %v160_v39, %v163_v40 }
  0x44   : > { %v176_v50 = vsel %vm172_vm4, %v160_v39, %v175_v47  ;;  %v179_v51 = vsel %vm173_vm5, %v166_v42, 920167782  ;;  %v183_v52 = vsel %vm173_vm5, %v169_v43, 1326507024  ;;  %v371_v53 = vsub.s32 32, %v370_v45 }
  0x45   : > { %v177_v54 = vsel %vm171_vm3, %v174_v46, %v176_v50  ;;  %v180_v55 = vsel %vm172_vm4, %v163_v40, %v179_v51  ;;  %v184_v56 = vsel %vm172_vm4, %v166_v42, %v183_v52  ;;  %v373_v57 = vshll.u32 %v955_v21, %v370_v45 }
  0x46   : > { %v181_v58 = vsel %vm171_vm3, %v178_v48, %v180_v55  ;;  %v185_v59 = vsel %vm171_vm3, %v182_v49, %v184_v56  ;;  %v193_v60 = vmul.u32 %v1074_v18, %v177_v54  ;;  %v372_v61 = vshrl.u32 %v955_v21, %v371_v53 }
  0x47   : > { %v1089_v62 = vmul.u32.u64.low %v1074_v18, %v185_v59  ;;  %v1090_v63 = vmul.u32.u64.high %v1074_v18, %v185_v59, %v1089_v62  ;;  %v1093_v2 = vmul.u32.u64.low %v1074_v18, %v181_v58  ;;  %v1094_v4 = vmul.u32.u64.high %v1074_v18, %v181_v58, %v1093_v2 }
  0x48   : > { %v374_v5 = vshrl.u32 %v956_v23, %v371_v53  ;;  %v376_v7 = vshll.u32 %v956_v23, %v370_v45  ;;  %v377_v8 = vshrl.u32 %v957_v25, %v371_v53  ;;  %v379_v9 = vshll.u32 %v957_v25, %v370_v45 }
  0x49   : > { %v380_v10 = vshrl.u32 %v958_v27, %v371_v53  ;;  %v382_v11 = vshll.u32 %v958_v27, %v370_v45  ;;  %v383_v12 = vshrl.u32 %v959_v29, %v371_v53  ;;  %v385_v14 = vshll.u32 %v959_v29, %v370_v45 }
  0x4a   : > { %v375_v15 = vor.u32 %v374_v5, %v373_v57  ;;  %v378_v16 = vor.u32 %v377_v8, %v376_v7  ;;  %v386_v17 = vshrl.u32 %v960_v36, %v371_v53  ;;  %vm388_vm6 = vcmp.lt.s32.totalorder %v369_v44, 1 }
  0x4b   : > { %vm195_vm7 = vc.u32 %v1090_v63, %v1093_v2  ;;  %v196_v20 = vadd.s32 1, %v1094_v4  ;;  %v381_v21 = vor.u32 %v380_v10, %v379_v9  ;;  %v404_v18 = vshll.u32 %v364_v19, 8 }
  0x4c   : > { %v384_v22 = vor.u32 %v383_v12, %v382_v11  ;;  %v387_v23 = vor.u32 %v386_v17, %v385_v14  ;;  %vm389_vm8 = vcmp.lt.s32.totalorder %v369_v44, 2  ;;  %vm390_vm9 = vcmp.lt.s32.totalorder %v369_v44, 3 }
  0x4d   : > { %v197_v24 = vsel %vm195_vm7, %v196_v20, %v1094_v4  ;;  %vm391_vm10 = vcmp.lt.s32.totalorder %v369_v44, 4  ;;  %v392_v25 = vsel %vm388_vm6, %v372_v61, %v375_v15  ;;  %v396_v26 = vsel %vm388_vm6, %v375_v15, %v378_v16 }
  0x4e   : > { %v198_v27 = vadd.s32 %v197_v24, %v193_v60  ;;  %v393_v28 = vsel %vm391_vm10, %v381_v21, 2102212464  ;;  %v397_v29 = vsel %vm391_vm10, %v384_v22, 920167782  ;;  %v400_v30 = vsel %vm388_vm6, %v378_v16, %v381_v21 }
  0x4f   : > { %v394_v31 = vsel %vm390_vm9, %v378_v16, %v393_v28  ;;  %v398_v32 = vsel %vm390_vm9, %v381_v21, %v397_v29  ;;  %v401_v13 = vsel %vm391_vm10, %v387_v23, 1326507024  ;;  %v194_v55 = vadd.s32 %v1093_v2, %v1090_v63 }
  0x50   : > { %v199_v19 = vadd.s32 536870912, %v198_v27  ;;  %v399_v33 = vsel %vm389_vm8, %v396_v26, %v398_v32  ;;  %v402_v34 = vsel %vm390_vm9, %v384_v22, %v401_v13  ;;  %v395_v35 = vsel %vm389_vm8, %v392_v25, %v394_v31 }
  0x51   : > { %v403_v36 = vsel %vm389_vm8, %v400_v30, %v402_v34  ;;  %v1107_v37 = vmul.u32.u64.low %v404_v18, %v399_v33  ;;  %v1108_v38 = vmul.u32.u64.high %v404_v18, %v399_v33, %v1107_v37  ;;  %v411_v43 = vmul.u32 %v404_v18, %v395_v35 }
  0x52   : > { %v200_v39 = vshrl.u32 %v199_v19, 30  ;;  %v1110_v40 = vmul.u32.u64.low %v404_v18, %v403_v36  ;;  %v1111_v41 = vmul.u32.u64.high %v404_v18, %v403_v36, %v1110_v40  ;;  %vm608_vm2 = vcmask 1042432  }
  0x53   : > { %v414_v45 = vadd.s32 1, %v1108_v38  ;;  %vm230_vm9 = vweird.f32 %v1059_v0  ;;  %vm611_vm10 = vcmask 1045504  }
  0x54   : > { %v201_v42 = vshll.u32 %v200_v39, 30  ;;  %vm413_vm11 = vc.u32 %v1111_v41, %v1107_v37  ;;  %v224_v15 = vsub.s32 4, %v200_v39  ;;  %v412_v63 = vadd.s32 %v1107_v37, %v1111_v41 }
  0x55   : > { %v415_v47 = vsel %vm413_vm11, %v414_v45, %v1108_v38  ;;  %vm614_vm11 = vcmask 1040384  }
  0x56   : > { %v202_v46 = vsub.s32 %v198_v27, %v201_v42  ;;  %v416_v49 = vadd.s32 %v415_v47, %v411_v43  ;;  %v225_v22 = vsel %vm140_vm14, %v224_v15, %v200_v39 }
  0x57   : > { %v227_v27 = vsel %vm139_vm15, 0, %v225_v22 }
  0x58   : > { %v204_v48 = vsub.s32 0, %v202_v46  ;;  %v417_v50 = vadd.s32 536870912, %v416_v49  ;;  %v231_v13 = vadd.s32 3, %v227_v27  ;;  %v335_v35 = vand.u32 3, %v227_v27 }
  0x5a   : > { %v807_v44 = vmin.u32 %v204_v48, %v202_v46  ;;  %v418_v52 = vshrl.u32 %v417_v50, 30  ;;  %v232_v34 = vand.u32 3, %v231_v13  ;;  %vm337_vm4 = vcmp.eq.s32.totalorder %v335_v35, 0 }
  0x5b   : > { %vm340_vm5 = vcmp.eq.s32.totalorder %v335_v35, 2  ;;  %vm336_vm8 = vcmp.lt.s32.totalorder %v335_v35, 2 }
  0x5c   : > { %v206_v51 = vclz %v807_v44  ;;  %v419_v54 = vshll.u32 %v418_v52, 30  ;;  %v442_v32 = vsub.s32 4, %v418_v52  ;;  %vm237_vm3 = vcmp.eq.s32.totalorder %v232_v34, 2 }
  0x5d   : > { %vm234_vm6 = vcmp.eq.s32.totalorder %v232_v34, 0  ;;  %vm233_vm7 = vcmp.lt.s32.totalorder %v232_v34, 2 }
  0x5e   : > { %v808_v53 = vadd.s32 4294967294, %v206_v51  ;;  %v420_v57 = vsub.s32 %v416_v49, %v419_v54  ;;  %v443_v33 = vsel %vm358_vm0, %v442_v32, %v418_v52  ;;  %v564_v54 = vcombine.high %v1059_v0, %v1059_v0 }
  0x5f   : > { %v445_v37 = vsel %vm357_vm1, 0, %v443_v33 }
  0x60   : > { %vm809_vm12 = vcmp.lt.s32.totalorder %v808_v53, 0  ;;  %v422_v61 = vsub.s32 0, %v420_v57  ;;  %v449_v43 = vadd.s32 3, %v445_v37  ;;  %v1128_v49 = vand.u32 3, %v445_v37 }
  0x61   : > { %v209_v56 = vsel %vm809_vm12, 0, %v808_v53  ;;  %vm617_vm12 = vcmask 1043456  }
  0x62   : > { %v210_v58 = vsub.s32 32, %v209_v56  ;;  %v211_v59 = vshll.u32 %v202_v46, %v209_v56  ;;  %v214_v60 = vsub.s32 4294967266, %v209_v56  ;;  %v815_v5 = vmin.u32 %v422_v61, %v420_v57 }
  0x63   : > { %v450_v51 = vand.u32 3, %v449_v43 }
  0x64   : > { %v212_v62 = vshrl.u32 %v194_v55, %v210_v58  ;;  %v215_v4 = vadd.s32 127, %v214_v60  ;;  %v424_v9 = vclz %v815_v5 }
  0x66   : > { %v213_v7 = vor.u32 %v212_v62, %v211_v59  ;;  %v216_v8 = vshll.u32 %v215_v4, 23  ;;  %v816_v12 = vadd.s32 4294967294, %v424_v9 }
  0x68   : > { %v217_v10 = vor.u32 4788187, %v216_v8  ;;  %v220_v11 = vcvt.s32.f32 %v213_v7  ;;  %vm817_vm13 = vcmp.lt.s32.totalorder %v816_v12, 0 }
  0x69   : > { %v427_v16 = vsel %vm817_vm13, 0, %v816_v12  ;;  %vm620_vm13 = vcmask 1046528  }
  0x6a   : > { %v218_v14 = vand.u32 2147483647, %v217_v10  ;;  %v428_v17 = vsub.s32 32, %v427_v16  ;;  %v429_v20 = vshll.u32 %v420_v57, %v427_v16  ;;  %v432_v21 = vsub.s32 4294967266, %v427_v16 }
  0x6c   : > { %v221_v2 = vmul.f32 %v220_v11, %v218_v14  ;;  %v430_v23 = vshrl.u32 %v412_v63, %v428_v17  ;;  %v433_v24 = vadd.s32 127, %v432_v21 }
  0x6e   : > { %v222_v18 = vxor.u32 2147483648, %v221_v2  ;;  %v431_v28 = vor.u32 %v430_v23, %v429_v20  ;;  %v434_v29 = vshll.u32 %v433_v24, 23 }
  0x70   : > { %v223_v25 = vsel %vm140_vm14, %v222_v18, %v221_v2  ;;  %v435_v30 = vor.u32 4788187, %v434_v29  ;;  %v438_v31 = vcvt.s32.f32 %v431_v28  ;;  %vm448_vm14 = vweird.f32 %v1064_v3 }
  0x71   : > { %v226_v26 = vsel %vm139_vm15, %v1059_v0, %v223_v25  ;;  %vm623_vm15 = vcmask 1041408  }
  0x72   : > { %880 = vcosq.f32 %v226_v26  ;;  %v436_v19 = vand.u32 2147483647, %v435_v30 }
  0x73   : > { %882 = vsinq.f32 %v226_v26 }
  0x74   : > { %v439_v1 = vmul.f32 %v438_v31, %v436_v19 }
  0x76   : > { %v440_v36 = vxor.u32 2147483648, %v439_v1 }
  0x78   : > { %v441_v38 = vsel %vm358_vm0, %v440_v36, %v439_v1  ;;  %vm555_vm0 = vcmp.eq.s32.totalorder %v1128_v49, 0 }
  0x79   : > { %v444_v40 = vsel %vm357_vm1, %v1064_v3, %v441_v38  ;;  %vm451_vm1 = vcmp.lt.s32.totalorder %v450_v51, 2 }
  0x7a   : > { %884 = vcosq.f32 %v444_v40 }
  0x7b   : > { %886 = vsinq.f32 %v444_v40 }
  0x7c   : > { %v881_v39 = vpop.eup %880 }
  0x7d   : > { %v883_v41 = vpop.eup %882  ;;  %v238_v42 = vxor.u32 2147483648, %v881_v39 }
  0x7e   : > { %v235_v45 = vxor.u32 2147483648, %v883_v41 }
  0x7f   : > { %v239_v6 = vsel %vm237_vm3, %v238_v42, %v883_v41  ;;  %v342_v46 = vsel %vm340_vm5, %v238_v42, %v883_v41  ;;  %vm452_vm3 = vcmp.eq.s32.totalorder %v450_v51, 0  ;;  %vm626_vm5 = vcmask 1044480  }
  0x80   : > { %v236_v47 = vsel %vm234_vm6, %v881_v39, %v235_v45  ;;  %v339_v48 = vsel %vm337_vm4, %v881_v39, %v235_v45  ;;  %vm554_vm4 = vcmp.lt.s32.totalorder %v1128_v49, 2  ;;  %vm455_vm6 = vcmp.eq.s32.totalorder %v450_v51, 2 }
  0x81   : > { %v240_v44 = vsel %vm233_vm7, %v236_v47, %v239_v6  ;;  %v343_v50 = vsel %vm336_vm8, %v339_v48, %v342_v46  ;;  %vm558_vm7 = vcmp.eq.s32.totalorder %v1128_v49, 2 }
  0x82   : > { %v241_v52 = vsel %vm230_vm9, nan, %v240_v44  ;;  %v344_v53 = vsel %vm230_vm9, nan, %v343_v50 }
  0x83   : > { %v568_v55 = vrot.slane %v241_v52, 5  ;;  %v574_v56 = vrot.slane %v344_v53, 2  ;;  %v345_v57 = vmul.f32 2.0, %v241_v52  ;;  %v347_v58 = vsub.f32 %v344_v53, %v241_v52 }
  0x84   : > { %v348_v59 = vadd.f32 %v344_v53, %v241_v52  ;;  %v567_v60 = vcombine.high %v241_v52, %v241_v52  ;;  %v573_v61 = vcombine.high %v344_v53, %v344_v53  ;;  %v885_v10 = vpop.eup %884 }
  0x85   : > { %v609_v62 = vsel %vm608_vm2, %v1059_v0, %v568_v55  ;;  %v346_v4 = vmul.f32 %v345_v57, %v344_v53  ;;  %v887_v15 = vpop.eup %886  ;;  %v456_v25 = vxor.u32 2147483648, %v885_v10 }
  0x86   : > { %v612_v5 = vsel %vm611_vm10, %v609_v62, %v574_v56  ;;  %v349_v7 = vmul.f32 %v348_v59, %v347_v58  ;;  %v569_v8 = vrot.slane %v567_v60, 5  ;;  %v575_v9 = vrot.slane %v573_v61, 2 }
  0x87   : > { %631 = vxpose.xlu0.b32.start [1/4] (short) %v612_v5, 128  ;;  %v350_v11 = vmul.f32 2.0, %v346_v4  ;;  %v580_v12 = vrot.slane %v346_v4, 7  ;;  %v579_v14 = vcombine.high %v346_v4, %v346_v4  ;;  %v453_v24 = vxor.u32 2147483648, %v887_v15 }
  0x88   : > { %v610_v0 = vsel %vm608_vm2, %v564_v54, %v569_v8  ;;  %v585_v63 = vcombine.low %v349_v7, %v349_v7  ;;  %v352_v2 = vsub.f32 %v349_v7, %v346_v4  ;;  %v353_v16 = vadd.f32 %v349_v7, %v346_v4 }
  0x89   : > { %v613_v17 = vsel %vm611_vm10, %v610_v0, %v575_v9  ;;  %v351_v20 = vmul.f32 %v350_v11, %v349_v7  ;;  %v615_v21 = vsel %vm614_vm11, %v574_v56, %v580_v12  ;;  %v581_v18 = vrot.slane %v579_v14, 7 }
  0x8a   : > { %663 = vxpose.xlu1.b32.start [1/4] (short) %v613_v17, 128  ;;  %v618_v22 = vsel %vm617_vm12, %v615_v21, %v585_v63  ;;  %v354_v23 = vmul.f32 %v353_v16, %v352_v2  ;;  %v454_v30 = vsel %vm452_vm3, %v885_v10, %v453_v24  ;;  %v457_v31 = vsel %vm455_vm6, %v456_v25, %v887_v15 }
  0x8b   : > { %v589_v26 = vrot.slane %v351_v20, 1  ;;  %v588_v27 = vcombine.high %v351_v20, %v351_v20  ;;  %v616_v28 = vsel %vm614_vm11, %v575_v9, %v581_v18  ;;  %v458_v1 = vsel %vm451_vm1, %v454_v30, %v457_v31 }
  0x8c   : > { %v619_v29 = vsel %vm617_vm12, %v616_v28, %v349_v7  ;;  %v595_v32 = vrot.slane %v354_v23, 6  ;;  %v594_v33 = vcombine.high %v354_v23, %v354_v23  ;;  %v459_v34 = vsel %vm448_vm14, nan, %v458_v1 }
  0x8d   : > { %v621_v13 = vsel %vm620_vm13, %v618_v22, %v589_v26  ;;  %v590_v19 = vrot.slane %v588_v27, 1  ;;  %v557_v36 = vsel %vm555_vm0, %v885_v10, %v453_v24  ;;  %v560_v37 = vsel %vm558_vm7, %v456_v25, %v887_v15 }
  0x8e   : > { %632 = vxpose.xlu0.b32.cont [2/4] (short) %v621_v13, 128  ;;  %v624_v35 = vsel %vm623_vm15, %v589_v26, %v595_v32  ;;  %v601_v39 = vrot.slane %v459_v34, 3  ;;  %v596_v40 = vrot.slane %v594_v33, 6  ;;  %v600_v41 = vcombine.high %v459_v34, %v459_v34 }
  0x8f   : > { %v622_v38 = vsel %vm620_vm13, %v619_v29, %v590_v19  ;;  %v561_v42 = vsel %vm554_vm4, %v557_v36, %v560_v37 }
  0x90   : > { %664 = vxpose.xlu1.b32.cont [2/4] (short) %v622_v38, 128  ;;  %v627_v43 = vsel %vm626_vm5, %v624_v35, %v601_v39  ;;  %v602_v45 = vrot.slane %v600_v41, 3  ;;  %v625_v6 = vsel %vm623_vm15, %v590_v19, %v596_v40  ;;  %v562_v46 = vsel %vm448_vm14, nan, %v561_v42 }
  0x91   : > { %v606_v47 = vcombine.high %v562_v46, %v562_v46  ;;  %v629_v44 = vsel %vm608_vm2, %v562_v46, 0.0 }
  0x92   : > { %633 = vxpose.xlu0.b32.cont [3/4] (short) %v627_v43, 128  ;;  %v628_v48 = vsel %vm626_vm5, %v625_v6, %v602_v45 }
  0x93   : > { %v630_v50 = vsel %vm608_vm2, %v606_v47, 0.0  ;;  %vm695_vm2 = vcmask 220160  }
  0x94   : > { %665 = vxpose.xlu1.b32.cont [3/4] (short) %v628_v48, 128 }
  0x96   : > { %634 = vxpose.xlu0.b32.end [4/4] (short) %v629_v44, 128 }
  0x98   : > { %666 = vxpose.xlu1.b32.end [4/4] (short) %v630_v50, 128 }
 0x10a   : > { %v647_v3 = vpop.trf.xlu0 }
 0x10b   : > { %696 = vst.msk [vmem:[%s1169_s21] sm:$0xff] %vm695_vm2, %v647_v3 }
 0x10c   : > { %v679_v49 = vpop.trf.xlu1 }
 0x10d   : > { %712 = vst.msk [vmem:[%s1169_s21 + $0x80] sm:$0xff] %vm695_vm2, %v679_v49 }
 0x10e   : > { %v648_v51 = vpop.trf.xlu0 }
 0x10f   : > { %697 = vst.msk [vmem:[%s1169_s21 + $0x8] sm:$0xff] %vm695_vm2, %v648_v51 }
 0x110   : > { %v680_v52 = vpop.trf.xlu1 }
 0x111   : > { %713 = vst.msk [vmem:[%s1169_s21 + $0x88] sm:$0xff] %vm695_vm2, %v680_v52 }
 0x112   : > { %v649_v53 = vpop.trf.xlu0 }
 0x113   : > { %698 = vst.msk [vmem:[%s1169_s21 + $0x10] sm:$0xff] %vm695_vm2, %v649_v53 }
 0x114   : > { %v681_v54 = vpop.trf.xlu1 }
 0x115   : > { %714 = vst.msk [vmem:[%s1169_s21 + $0x90] sm:$0xff] %vm695_vm2, %v681_v54 }
 0x116   : > { %v650_v55 = vpop.trf.xlu0 }
 0x117   : > { %699 = vst.msk [vmem:[%s1169_s21 + $0x18] sm:$0xff] %vm695_vm2, %v650_v55 }
 0x118   : > { %v682_v56 = vpop.trf.xlu1 }
 0x119   : > { %715 = vst.msk [vmem:[%s1169_s21 + $0x98] sm:$0xff] %vm695_vm2, %v682_v56 }
 0x11a   : > { %v651_v57 = vpop.trf.xlu0 }
 0x11b   : > { %700 = vst.msk [vmem:[%s1169_s21 + $0x20] sm:$0xff] %vm695_vm2, %v651_v57 }
 0x11c   : > { %v683_v58 = vpop.trf.xlu1 }
 0x11d   : > { %716 = vst.msk [vmem:[%s1169_s21 + $0xa0] sm:$0xff] %vm695_vm2, %v683_v58 }
 0x11e   : > { %v652_v59 = vpop.trf.xlu0 }
 0x11f   : > { %701 = vst.msk [vmem:[%s1169_s21 + $0x28] sm:$0xff] %vm695_vm2, %v652_v59 }
 0x120   : > { %v684_v60 = vpop.trf.xlu1 }
 0x121   : > { %717 = vst.msk [vmem:[%s1169_s21 + $0xa8] sm:$0xff] %vm695_vm2, %v684_v60 }
 0x122   : > { %v653_v61 = vpop.trf.xlu0 }
 0x123   : > { %702 = vst.msk [vmem:[%s1169_s21 + $0x30] sm:$0xff] %vm695_vm2, %v653_v61 }
 0x124   : > { %v685_v62 = vpop.trf.xlu1 }
 0x125   : > { %718 = vst.msk [vmem:[%s1169_s21 + $0xb0] sm:$0xff] %vm695_vm2, %v685_v62 }
 0x126   : > { %v654_v4 = vpop.trf.xlu0 }
 0x127   : > { %703 = vst.msk [vmem:[%s1169_s21 + $0x38] sm:$0xff] %vm695_vm2, %v654_v4 }
 0x128   : > { %v686_v5 = vpop.trf.xlu1 }
 0x129   : > { %719 = vst.msk [vmem:[%s1169_s21 + $0xb8] sm:$0xff] %vm695_vm2, %v686_v5 }
 0x12a   : > { %v655_v7 = vpop.trf.xlu0 }
 0x12b   : > { %704 = vst.msk [vmem:[%s1169_s21 + $0x40] sm:$0xff] %vm695_vm2, %v655_v7 }
 0x12c   : > { %v687_v8 = vpop.trf.xlu1 }
 0x12d   : > { %720 = vst.msk [vmem:[%s1169_s21 + $0xc0] sm:$0xff] %vm695_vm2, %v687_v8 }
 0x12e   : > { %v656_v9 = vpop.trf.xlu0 }
 0x12f   : > { %705 = vst.msk [vmem:[%s1169_s21 + $0x48] sm:$0xff] %vm695_vm2, %v656_v9 }
 0x130   : > { %v688_v10 = vpop.trf.xlu1 }
 0x131   : > { %721 = vst.msk [vmem:[%s1169_s21 + $0xc8] sm:$0xff] %vm695_vm2, %v688_v10 }
 0x132   : > { %v657_v11 = vpop.trf.xlu0 }
 0x133   : > { %706 = vst.msk [vmem:[%s1169_s21 + $0x50] sm:$0xff] %vm695_vm2, %v657_v11 }
 0x134   : > { %v689_v12 = vpop.trf.xlu1 }
 0x135   : > { %722 = vst.msk [vmem:[%s1169_s21 + $0xd0] sm:$0xff] %vm695_vm2, %v689_v12 }
 0x136   : > { %v658_v14 = vpop.trf.xlu0 }
 0x137   : > { %707 = vst.msk [vmem:[%s1169_s21 + $0x58] sm:$0xff] %vm695_vm2, %v658_v14 }
 0x138   : > { %v690_v15 = vpop.trf.xlu1 }
 0x139   : > { %723 = vst.msk [vmem:[%s1169_s21 + $0xd8] sm:$0xff] %vm695_vm2, %v690_v15 }
 0x13a   : > { %v659_v0 = vpop.trf.xlu0 }
 0x13b   : > { %708 = vst.msk [vmem:[%s1169_s21 + $0x60] sm:$0xff] %vm695_vm2, %v659_v0 }
 0x13c   : > { %v691_v63 = vpop.trf.xlu1 }
 0x13d   : > { %724 = vst.msk [vmem:[%s1169_s21 + $0xe0] sm:$0xff] %vm695_vm2, %v691_v63 }
 0x13e   : > { %v660_v2 = vpop.trf.xlu0 }
 0x13f   : > { %709 = vst.msk [vmem:[%s1169_s21 + $0x68] sm:$0xff] %vm695_vm2, %v660_v2 }
 0x140   : > { %v692_v16 = vpop.trf.xlu1 }
 0x141   : > { %725 = vst.msk [vmem:[%s1169_s21 + $0xe8] sm:$0xff] %vm695_vm2, %v692_v16 }
 0x142   : > { %v661_v17 = vpop.trf.xlu0 }
 0x143   : > { %710 = vst.msk [vmem:[%s1169_s21 + $0x70] sm:$0xff] %vm695_vm2, %v661_v17 }
 0x144   : > { %v693_v20 = vpop.trf.xlu1 }
 0x145   : > { %726 = vst.msk [vmem:[%s1169_s21 + $0xf0] sm:$0xff] %vm695_vm2, %v693_v20 }
 0x146   : > { %v662_v21 = vpop.trf.xlu0 }
 0x147   : > { %711 = vst.msk [vmem:[%s1169_s21 + $0x78] sm:$0xff] %vm695_vm2, %v662_v21 }
 0x148   : > { %v694_v18 = vpop.trf.xlu1 }
 0x149   : > { %727 = vst.msk [vmem:[%s1169_s21 + $0xf8] sm:$0xff] %vm695_vm2, %v694_v18 }
 0x14a PF: > { %p11_p8 = scmp.ge.s32.totalorder %s991_s11, 10   ;;  %s1254_s6 = smov %s944_s7 }
 0x14b   : > { %s1255_s7 = smov %s948_s8  ;;  %s1256_s8 = smov %s1001_s14 }
 0x14c   : > { %s1257_s9 = smov %s991_s11  ;;  %13 = sbr.rel (!%p11_p8) target bundleno = 3 (0x3), region = 64 }
 0x153   :  { %750 = vsyncpa [#allocation3], 1 }
 0x154   :  { %752 = vsyncpa [#allocation3 + $0x1], 1 }

// kernel: tpu_custom_call.1
= control target key start
LH: loop header
LB: loop body
LE: loop exit
PB: predicated region body
PF: predicated region fallthrough
CT: control target
= control target key end

     0   :  { %6 = vsyncpa [#allocation3], 0  ;;  %s1140_s0 = inlined_call_operand.hbm [shape: f32[3,2048], index: 0, kind: input, shape index: {}]   ;;  %s1141_s1 = inlined_call_operand.hbm [shape: f32[9,3,2048], index: 1, kind: output, shape index: {}]  }
   0x1   :  { %8 = vsyncpa [#allocation3 + $0x1], 0 }
   0x2   :  { %9 = vsyncpa [#allocation4], 0 }
   0x3   :  { %11 = vsyncpa [#allocation4 + $0x1], 0  ;;  %s894_s6 = smov 0   ;;  %s896_s7 = smov 0  }
   0x4   :  { %s898_s8 = smov 0   ;;  %s900_s9 = smov 0  }
   0x5 LB: > { %s915_s10 = sadd.s32 4294967295, %s871_s9   ;;  %s665_s11 = sadd.s32 4294967294, %s871_s9   ;;  %s871_s9 = sphi %s900_s9, %s1155_s9   ;;  %s867_s8 = sphi %s898_s8, %s1154_s8   ;;  %s863_s7 = sphi %s896_s7, %s1153_s7   ;;  %s859_s6 = sphi %s894_s6, %s1152_s6  }
   0x6   : > { %s919_s12 = sadd.s32 1, %s871_s9   ;;  %s24_s13 = sadd.s32 1, %s867_s8 }
   0x7   : > { %s21_s14 = ssub.s32 %s871_s9, %s919_s12  ;;  %p31_p0 = scmp.ne.s32.totalorder %s867_s8, %s863_s7 }
   0x8   : > { %p22_p1 = scmp.eq.s32.totalorder %s21_s14, 0  ;;  %p32_p2 = scmp.eq.s32.totalorder %s871_s9, 0 }
   0x9   : > { %p37_p3 = scmp.ne.s32.totalorder %s863_s7, %s859_s6  ;;  %p38_p4 = scmp.eq.s32.totalorder %s915_s10, 0 }
   0xa   : > { %s931_s15 = scalar_select %p22_p1, %s867_s8, %s24_s13  }
   0xb   : > { %p933_p5 = por %p32_p2, %p31_p0  ;;  %p937_p6 = por %p38_p4, %p37_p3 }
   0xc   : > { %p61_p7 = scmp.eq.s32.totalorder %s915_s10, 7  ;;  %p67_p8 = scmp.eq.s32.totalorder %s665_s11, 7 }
   0xd   : > { %p724_p9 = scmp.lt.s32.totalorder %s871_s9, 8  ;;  %s87_s20 = sand.u32 1, %s867_s8  }
   0xe   : > { %p943_p10 = por %p61_p7, %p31_p0  ;;  %p947_p11 = por %p67_p8, %p37_p3 }
   0xf   : > { %s701_s21 = sshll.u32 %s871_s9, 7  ;;  %s668_s22 = sshll.u32 %s87_s20, 3 }
  0x10   : > { %s1145_s18 = scalar_select %p943_p10, 1, 0 }
  0x11   : > { %s1146_s19 = scalar_select %p947_p11, 1, 0 }
  0x12   : > { %s956_s25 = scalar_lea.hbm %s1140_s0, %s701_s21  ;;  %s91_s26 = scalar_lea.vmem [#allocation2], %s668_s22 }
  0x13   : > { %s99_s27 = sshll.u32 %s91_s26, 4  ;;  %p960_p12 = pnand %p724_p9, %p933_p5  ;;  %s964_s27 = int_to_ptr.vmem [resolvable:$true] %s99_s27 }
  0x14   : > { %s88_s29 = scalar_lea.sflag [#allocation3], %s87_s20  ;;  %s775_s30 = scalar_lea.hbm %s956_s25, 128 }
  0x15   : > { %p776_p1 = scmp.ne.s32.totalorder %s956_s25, %s775_s30  ;;  %p777_p2 = pneg %p960_p12 }
  0x16   : > { %s780_s4 = scalar_lea.hbm %s1140_s0, 1024  ;;  %p781_p5 = scmp.lt.u32.totalorder %s956_s25, %s1140_s0 }
  0x17   : > { %p778_p3 = pnand %p777_p2, %p776_p1  ;;  %p782_p7 = scmp.lt.u32.totalorder %s780_s4, %s775_s30 }
  0x18   : > { %p784_p9 = scmp.lt.u32.totalorder %s775_s30, %s956_s25 }
  0x19   : > { %p779_p4 = pneg %p778_p3  ;;  %p783_p8 = por %p782_p7, %p781_p5 }
  0x1b   : > { %p785_p13 = por %p784_p9, %p783_p8 }
  0x1d   : > { %p786_p0 = pnand %p785_p13, %p779_p4 }
  0x1f   : > { %789 = shalt.err (!%p786_p0)
}
  0x20   : > { %s790_s13 = scalar_lea.vmem %s964_s27, 128  ;;  %s873_s14 = smov [#allocation2]  }
  0x21   : > { %p791_p1 = scmp.ne.s32.totalorder %s964_s27, %s790_s13  ;;  %s795_s16 = sshll.u32 %s873_s14, 4  ;;  %s796_s16 = int_to_ptr.vmem [resolvable:$false] %s795_s16 }
  0x22   : > { %s797_s20 = scalar_lea.vmem %s796_s16, 256  ;;  %p798_p10 = scmp.lt.s32.totalorder %s964_s27, %s796_s16 }
  0x23   : > { %p793_p3 = pnand %p791_p1, %p777_p2  ;;  %p799_p5 = scmp.lt.s32.totalorder %s797_s20, %s790_s13 }
  0x25   : > { %p794_p11 = pneg %p793_p3  ;;  %p800_p7 = por %p799_p5, %p798_p10 }
  0x27   : > { %p801_p8 = pnand %p800_p7, %p794_p11 }
  0x29   : > { %804 = shalt.err (!%p801_p8)
}
  0x2a   : > { %719 = dma.hbm_to_vmem [thread:$0]  (!%p960_p12), %s956_s25, 128, %s964_s27, %s88_s29  }
  0x2b   : > { %p1148_p13 = scmp.lt.s32.totalorder %s871_s9, 9  ;;  %p1149_p0 = scmp.ge.s32.totalorder %s871_s9, 1 }
  0x2d   : > { %p105_p2 = pnand %p1149_p0, %p1148_p13 }
  0x2e   : > { %s998_s21 = sand.u32 (!%p105_p2), 1, %s863_s7  }
  0x2f   : > { %108 = sbr.rel (%p105_p2) target bundleno = 163 (0xa3), region = 24  ;;  %s672_s22 = sshll.u32 (!%p105_p2), %s998_s21, 3 }
  0x30   : > { %s111_s23 = scalar_lea.sflag (!%p105_p2), [#allocation3], %s998_s21  ;;  %s114_s24 = scalar_lea.vmem (!%p105_p2), [#allocation2], %s672_s22 }
  0x36   : > { %850 = dma.done.wait (%p937_p6), %s111_s23, 128  }
  0x37   : > { %852 = vsyncadd (%p937_p6), %s111_s23, 4294967168  ;;  %s703_s25 = smul.u32 72, %s998_s21  ;;  %v1007_v0 = vld [vmem:[%s114_s24] sm:$0x77]  ;;  %v874_v21 = vmov 683565275  }
  0x38   : > { %v139_v1 = vand.u32 2139095040, %v1007_v0  ;;  %v136_v2 = vand.u32 2147483647, %v1007_v0  ;;  %v1016_v3 = vmul.f32 8.0, %v1007_v0  ;;  %v875_v23 = vmov 2475754826  }
  0x39   : > { %s1010_s26 = scalar_lea.vmem [#allocation5], %s703_s25  ;;  %v876_v25 = vmov 2131351028   ;;  %v877_v27 = vmov 2102212464   ;;  %vm138_vm14 = vcmp.lt.s32.totalorder %v1007_v0, 0 }
  0x3a   : > { %561 = vst [vmem:[%s1010_s26] sm:$0x77] %v1007_v0  ;;  %v140_v4 = vshrl.u32 %v139_v1, 23  ;;  %v143_v5 = vand.u32 8388607, %v136_v2  ;;  %v354_v6 = vand.u32 2147483647, %v1016_v3 }
  0x3b   : > { %v357_v7 = vand.u32 2139095040, %v1016_v3  ;;  %v878_v29 = vmov 920167782   ;;  %v879_v36 = vmov 1326507024   ;;  %s592_s17 = sshll.u32 %s1010_s26, 4  ;;  %s1085_s17 = int_to_ptr.vmem [resolvable:$true] %s592_s17 }
  0x3c   : > { %v673_v8 = vadd.s32 4294967169, %v140_v4  ;;  %v144_v11 = vor.u32 8388608, %v143_v5  ;;  %v1024_v13 = vand.u32 8388607, %v354_v6  ;;  %vm137_vm15 = vcmp.le.f32.partialorder %v136_v2, 0.7853982 }
  0x3d   : > { %v358_v9 = vshrl.u32 %v357_v7, 23  ;;  %s702_s27 = sshll.u32 %s915_s10, 7  ;;  %s579_s30 = scalar_lea.sflag [#allocation4], %s998_s21 }
  0x3e   : > { %v146_v10 = vadd.s32 1, %v673_v8  ;;  %v1026_v18 = vshll.u32 %v144_v11, 8  ;;  %v362_v19 = vor.u32 8388608, %v1024_v13  ;;  %s1094_s29 = scalar_lea.hbm %s1141_s1, %s702_s27  ;;  %s805_s2 = scalar_lea.vmem %s1085_s17, 1152 }
  0x3f   : > { %v681_v12 = vadd.s32 4294967169, %v358_v9  ;;  %p806_p6 = scmp.ne.s32.totalorder %s1085_s17, %s805_s2  ;;  %p1150_p10 = scmp.ne.s32.totalorder %s1145_s18, 0 }
  0x40   : > { %vm147_vm0 = vcmp.gt.s32.totalorder %v146_v10, 0  ;;  %s880_s3 = smov [#allocation5]  }
  0x41   : > { %v148_v14 = vsel %vm147_vm0, %v146_v10, 0  ;;  %v364_v15 = vadd.s32 1, %v681_v12  ;;  %vm356_vm0 = vcmp.lt.s32.totalorder %v1016_v3, 0  ;;  %p807_p11 = pnand %p806_p6, %p1150_p10  ;;  %s809_s4 = sshll.u32 %s880_s3, 4  ;;  %s810_s4 = int_to_ptr.vmem [resolvable:$false] %s809_s4 }
  0x42   : > { %v149_v16 = vshrl.u32 %v148_v14, 5  ;;  %v150_v17 = vand.u32 31, %v148_v14  ;;  %s811_s5 = scalar_lea.vmem %s810_s4, 2304  ;;  %p812_p4 = scmp.lt.s32.totalorder %s1085_s17, %s810_s4 }
  0x43   : > { %vm365_vm1 = vcmp.gt.s32.totalorder %v364_v15, 0  ;;  %p808_p12 = pneg %p807_p11  ;;  %p813_p9 = scmp.lt.s32.totalorder %s811_s5, %s805_s2 }
  0x44   : > { %v151_v20 = vsub.s32 32, %v150_v17  ;;  %v153_v22 = vshll.u32 %v874_v21, %v150_v17  ;;  %v156_v24 = vshll.u32 %v875_v23, %v150_v17  ;;  %v159_v26 = vshll.u32 %v876_v25, %v150_v17 }
  0x45   : > { %v162_v28 = vshll.u32 %v877_v27, %v150_v17  ;;  %v165_v30 = vshll.u32 %v878_v29, %v150_v17  ;;  %vm168_vm2 = vcmp.lt.s32.totalorder %v149_v16, 1  ;;  %vm169_vm3 = vcmp.lt.s32.totalorder %v149_v16, 2  ;;  %p814_p1 = por %p813_p9, %p812_p4 }
  0x46   : > { %v152_v31 = vshrl.u32 %v874_v21, %v151_v20  ;;  %v154_v32 = vshrl.u32 %v875_v23, %v151_v20  ;;  %v157_v33 = vshrl.u32 %v876_v25, %v151_v20  ;;  %v160_v34 = vshrl.u32 %v877_v27, %v151_v20 }
  0x47   : > { %v163_v35 = vshrl.u32 %v878_v29, %v151_v20  ;;  %v166_v37 = vshrl.u32 %v879_v36, %v151_v20  ;;  %vm170_vm4 = vcmp.lt.s32.totalorder %v149_v16, 3  ;;  %vm171_vm5 = vcmp.lt.s32.totalorder %v149_v16, 4  ;;  %p815_p3 = pnand %p814_p1, %p808_p12 }
  0x48   : > { %v155_v38 = vor.u32 %v154_v32, %v153_v22  ;;  %v158_v39 = vor.u32 %v157_v33, %v156_v24  ;;  %v161_v40 = vor.u32 %v160_v34, %v159_v26  ;;  %v366_v41 = vsel %vm365_vm1, %v364_v15, 0 }
  0x49   : > { %v164_v42 = vor.u32 %v163_v35, %v162_v28  ;;  %v167_v43 = vor.u32 %v166_v37, %v165_v30  ;;  %v367_v44 = vshrl.u32 %v366_v41, 5  ;;  %v368_v45 = vand.u32 31, %v366_v41 }
  0x4a   : > { %v172_v46 = vsel %vm168_vm2, %v152_v31, %v155_v38  ;;  %v173_v47 = vsel %vm171_vm5, %v161_v40, 2102212464  ;;  %v176_v48 = vsel %vm168_vm2, %v155_v38, %v158_v39  ;;  %v180_v49 = vsel %vm168_vm2, %v158_v39, %v161_v40 }
  0x4b   : > { %v174_v50 = vsel %vm170_vm4, %v158_v39, %v173_v47  ;;  %v177_v51 = vsel %vm171_vm5, %v164_v42, 920167782  ;;  %v181_v52 = vsel %vm171_vm5, %v167_v43, 1326507024  ;;  %v369_v53 = vsub.s32 32, %v368_v45 }
  0x4c   : > { %v175_v54 = vsel %vm169_vm3, %v172_v46, %v174_v50  ;;  %v178_v55 = vsel %vm170_vm4, %v161_v40, %v177_v51  ;;  %v182_v56 = vsel %vm170_vm4, %v164_v42, %v181_v52  ;;  %v371_v57 = vshll.u32 %v874_v21, %v368_v45 }
  0x4d   : > { %v179_v58 = vsel %vm169_vm3, %v176_v48, %v178_v55  ;;  %v183_v59 = vsel %vm169_vm3, %v180_v49, %v182_v56  ;;  %v191_v60 = vmul.u32 %v1026_v18, %v175_v54  ;;  %v370_v61 = vshrl.u32 %v874_v21, %v369_v53 }
  0x4e   : > { %v1041_v62 = vmul.u32.u64.low %v1026_v18, %v183_v59  ;;  %v1042_v63 = vmul.u32.u64.high %v1026_v18, %v183_v59, %v1041_v62  ;;  %v1045_v1 = vmul.u32.u64.low %v1026_v18, %v179_v58  ;;  %v1046_v4 = vmul.u32.u64.high %v1026_v18, %v179_v58, %v1045_v1 }
  0x4f   : > { %v372_v5 = vshrl.u32 %v875_v23, %v369_v53  ;;  %v374_v7 = vshll.u32 %v875_v23, %v368_v45  ;;  %v375_v8 = vshrl.u32 %v876_v25, %v369_v53  ;;  %v377_v9 = vshll.u32 %v876_v25, %v368_v45 }
  0x50   : > { %v378_v10 = vshrl.u32 %v877_v27, %v369_v53  ;;  %v380_v11 = vshll.u32 %v877_v27, %v368_v45  ;;  %v381_v12 = vshrl.u32 %v878_v29, %v369_v53  ;;  %v383_v14 = vshll.u32 %v878_v29, %v368_v45 }
  0x51   : > { %v373_v15 = vor.u32 %v372_v5, %v371_v57  ;;  %v376_v16 = vor.u32 %v375_v8, %v374_v7  ;;  %v384_v17 = vshrl.u32 %v879_v36, %v369_v53  ;;  %vm386_vm6 = vcmp.lt.s32.totalorder %v367_v44, 1 }
  0x52   : > { %vm193_vm7 = vc.u32 %v1042_v63, %v1045_v1  ;;  %v194_v20 = vadd.s32 1, %v1046_v4  ;;  %v379_v21 = vor.u32 %v378_v10, %v377_v9  ;;  %v402_v18 = vshll.u32 %v362_v19, 8 }
  0x53   : > { %v382_v22 = vor.u32 %v381_v12, %v380_v11  ;;  %v385_v23 = vor.u32 %v384_v17, %v383_v14  ;;  %vm387_vm8 = vcmp.lt.s32.totalorder %v367_v44, 2  ;;  %vm388_vm9 = vcmp.lt.s32.totalorder %v367_v44, 3 }
  0x54   : > { %v195_v24 = vsel %vm193_vm7, %v194_v20, %v1046_v4  ;;  %vm389_vm10 = vcmp.lt.s32.totalorder %v367_v44, 4  ;;  %v390_v25 = vsel %vm386_vm6, %v370_v61, %v373_v15  ;;  %v394_v26 = vsel %vm386_vm6, %v373_v15, %v376_v16 }
  0x55   : > { %v196_v27 = vadd.s32 %v195_v24, %v191_v60  ;;  %v391_v28 = vsel %vm389_vm10, %v379_v21, 2102212464  ;;  %v395_v29 = vsel %vm389_vm10, %v382_v22, 920167782  ;;  %v398_v30 = vsel %vm386_vm6, %v376_v16, %v379_v21 }
  0x56   : > { %v392_v31 = vsel %vm388_vm9, %v376_v16, %v391_v28  ;;  %v396_v32 = vsel %vm388_vm9, %v379_v21, %v395_v29  ;;  %v399_v13 = vsel %vm389_vm10, %v385_v23, 1326507024  ;;  %v192_v55 = vadd.s32 %v1045_v1, %v1042_v63 }
  0x57   : > { %v197_v19 = vadd.s32 536870912, %v196_v27  ;;  %v397_v33 = vsel %vm387_vm8, %v394_v26, %v396_v32  ;;  %v400_v34 = vsel %vm388_vm9, %v382_v22, %v399_v13  ;;  %v393_v35 = vsel %vm387_vm8, %v390_v25, %v392_v31 }
  0x58   : > { %v401_v36 = vsel %vm387_vm8, %v398_v30, %v400_v34  ;;  %v1059_v37 = vmul.u32.u64.low %v402_v18, %v397_v33  ;;  %v1060_v38 = vmul.u32.u64.high %v402_v18, %v397_v33, %v1059_v37  ;;  %v409_v43 = vmul.u32 %v402_v18, %v393_v35 }
  0x59   : > { %v198_v39 = vshrl.u32 %v197_v19, 30  ;;  %v1062_v40 = vmul.u32.u64.low %v402_v18, %v401_v36  ;;  %v1063_v41 = vmul.u32.u64.high %v402_v18, %v401_v36, %v1062_v40  ;;  %vm355_vm1 = vcmp.le.f32.partialorder %v354_v6, 0.7853982 }
  0x5a   : > { %v412_v45 = vadd.s32 1, %v1060_v38  ;;  %vm228_vm8 = vweird.f32 %v1007_v0 }
  0x5b   : > { %v199_v42 = vshll.u32 %v198_v39, 30  ;;  %vm411_vm11 = vc.u32 %v1063_v41, %v1059_v37  ;;  %v222_v15 = vsub.s32 4, %v198_v39  ;;  %v410_v63 = vadd.s32 %v1059_v37, %v1063_v41 }
  0x5c   : > { %v413_v47 = vsel %vm411_vm11, %v412_v45, %v1060_v38 }
  0x5d   : > { %v200_v46 = vsub.s32 %v196_v27, %v199_v42  ;;  %v414_v49 = vadd.s32 %v413_v47, %v409_v43  ;;  %v223_v22 = vsel %vm138_vm14, %v222_v15, %v198_v39 }
  0x5e   : > { %v225_v27 = vsel %vm137_vm15, 0, %v223_v22 }
  0x5f   : > { %v202_v48 = vsub.s32 0, %v200_v46  ;;  %v415_v50 = vadd.s32 536870912, %v414_v49  ;;  %v229_v32 = vadd.s32 3, %v225_v27  ;;  %v333_v2 = vand.u32 3, %v225_v27 }
  0x61   : > { %v674_v44 = vmin.u32 %v202_v48, %v200_v46  ;;  %v416_v52 = vshrl.u32 %v415_v50, 30  ;;  %v230_v34 = vand.u32 3, %v229_v32  ;;  %vm338_vm3 = vcmp.eq.s32.totalorder %v333_v2, 2 }
  0x62   : > { %vm335_vm5 = vcmp.eq.s32.totalorder %v333_v2, 0  ;;  %vm334_vm7 = vcmp.lt.s32.totalorder %v333_v2, 2 }
  0x63   : > { %v204_v51 = vclz %v674_v44  ;;  %v417_v54 = vshll.u32 %v416_v52, 30  ;;  %v440_v19 = vsub.s32 4, %v416_v52  ;;  %vm235_vm2 = vcmp.eq.s32.totalorder %v230_v34, 2 }
  0x64   : > { %vm232_vm4 = vcmp.eq.s32.totalorder %v230_v34, 0  ;;  %vm231_vm6 = vcmp.lt.s32.totalorder %v230_v34, 2 }
  0x65   : > { %v675_v53 = vadd.s32 4294967294, %v204_v51  ;;  %v418_v57 = vsub.s32 %v414_v49, %v417_v54  ;;  %v441_v36 = vsel %vm356_vm0, %v440_v19, %v416_v52 }
  0x66   : > { %v443_v40 = vsel %vm355_vm1, 0, %v441_v36 }
  0x67   : > { %vm676_vm12 = vcmp.lt.s32.totalorder %v675_v53, 0  ;;  %v420_v61 = vsub.s32 0, %v418_v57  ;;  %v551_v52 = vand.u32 3, %v443_v40 }
  0x68   : > { %v207_v56 = vsel %vm676_vm12, 0, %v675_v53 }
  0x69   : > { %v208_v58 = vsub.s32 32, %v207_v56  ;;  %v209_v59 = vshll.u32 %v200_v46, %v207_v56  ;;  %v212_v60 = vsub.s32 4294967266, %v207_v56  ;;  %v682_v5 = vmin.u32 %v420_v61, %v418_v57 }
  0x6a   : > { %v447_v46 = vadd.s32 3, %v443_v40  ;;  %vm556_vm9 = vcmp.eq.s32.totalorder %v551_v52, 2  ;;  %vm552_vm12 = vcmp.lt.s32.totalorder %v551_v52, 2 }
  0x6b   : > { %v210_v62 = vshrl.u32 %v192_v55, %v208_v58  ;;  %v213_v4 = vadd.s32 127, %v212_v60  ;;  %v422_v9 = vclz %v682_v5 }
  0x6c   : > { %v448_v56 = vand.u32 3, %v447_v46 }
  0x6d   : > { %v211_v7 = vor.u32 %v210_v62, %v209_v59  ;;  %v214_v8 = vshll.u32 %v213_v4, 23  ;;  %v683_v12 = vadd.s32 4294967294, %v422_v9 }
  0x6e   : > { %vm453_vm10 = vcmp.eq.s32.totalorder %v448_v56, 2  ;;  %vm450_vm11 = vcmp.eq.s32.totalorder %v448_v56, 0 }
  0x6f   : > { %v215_v10 = vor.u32 4788187, %v214_v8  ;;  %v218_v11 = vcvt.s32.f32 %v211_v7  ;;  %vm684_vm13 = vcmp.lt.s32.totalorder %v683_v12, 0 }
  0x70   : > { %v425_v16 = vsel %vm684_vm13, 0, %v683_v12  ;;  %vm553_vm13 = vcmp.eq.s32.totalorder %v551_v52, 0 }
  0x71   : > { %v216_v14 = vand.u32 2147483647, %v215_v10  ;;  %v426_v17 = vsub.s32 32, %v425_v16  ;;  %v427_v20 = vshll.u32 %v418_v57, %v425_v16  ;;  %v430_v21 = vsub.s32 4294967266, %v425_v16 }
  0x73   : > { %v219_v1 = vmul.f32 %v218_v11, %v216_v14  ;;  %v428_v23 = vshrl.u32 %v410_v63, %v426_v17  ;;  %v431_v24 = vadd.s32 127, %v430_v21 }
  0x75   : > { %v220_v18 = vxor.u32 2147483648, %v219_v1  ;;  %v429_v28 = vor.u32 %v428_v23, %v427_v20  ;;  %v432_v29 = vshll.u32 %v431_v24, 23 }
  0x77   : > { %v221_v25 = vsel %vm138_vm14, %v220_v18, %v219_v1  ;;  %v433_v30 = vor.u32 4788187, %v432_v29  ;;  %v436_v31 = vcvt.s32.f32 %v429_v28  ;;  %vm449_vm14 = vcmp.lt.s32.totalorder %v448_v56, 2 }
  0x78   : > { %v224_v26 = vsel %vm137_vm15, %v1007_v0, %v221_v25  ;;  %vm446_vm15 = vweird.f32 %v1016_v3 }
  0x79   : > { %767 = vcosq.f32 %v224_v26  ;;  %v434_v13 = vand.u32 2147483647, %v433_v30 }
  0x7a   : > { %769 = vsinq.f32 %v224_v26 }
  0x7b   : > { %v437_v33 = vmul.f32 %v436_v31, %v434_v13 }
  0x7d   : > { %v438_v35 = vxor.u32 2147483648, %v437_v33 }
  0x7f   : > { %v439_v37 = vsel %vm356_vm0, %v438_v35, %v437_v33 }
  0x80   : > { %v442_v39 = vsel %vm355_vm1, %v1016_v3, %v439_v37 }
  0x81   : > { %771 = vcosq.f32 %v442_v39 }
  0x82   : > { %773 = vsinq.f32 %v442_v39 }
  0x83   : > { %v768_v38 = vpop.eup %767 }
  0x84   : > { %v770_v41 = vpop.eup %769  ;;  %v236_v42 = vxor.u32 2147483648, %v768_v38 }
  0x85   : > { %v233_v43 = vxor.u32 2147483648, %v770_v41 }
  0x86   : > { %v237_v6 = vsel %vm235_vm2, %v236_v42, %v770_v41  ;;  %v340_v45 = vsel %vm338_vm3, %v236_v42, %v770_v41 }
  0x87   : > { %v234_v47 = vsel %vm232_vm4, %v768_v38, %v233_v43  ;;  %v337_v48 = vsel %vm335_vm5, %v768_v38, %v233_v43 }
  0x88   : > { %v238_v49 = vsel %vm231_vm6, %v234_v47, %v237_v6  ;;  %v341_v44 = vsel %vm334_vm7, %v337_v48, %v340_v45 }
  0x89   : > { %v239_v50 = vsel %vm228_vm8, nan, %v238_v49  ;;  %v342_v51 = vsel %vm228_vm8, nan, %v341_v44 }
  0x8a   : > { %v343_v53 = vmul.f32 2.0, %v239_v50  ;;  %689 = vst [vmem:[%s1010_s26 + $0x8] sm:$0x77] %v239_v50  ;;  %v345_v54 = vsub.f32 %v342_v51, %v239_v50  ;;  %v346_v55 = vadd.f32 %v342_v51, %v239_v50  ;;  %690 = vst [vmem:[%s1010_s26 + $0x10] sm:$0x77] %v342_v51 }
  0x8b   : > { %v772_v58 = vpop.eup %771 }
  0x8c   : > { %v344_v0 = vmul.f32 %v343_v53, %v342_v51  ;;  %v347_v57 = vmul.f32 %v346_v55, %v345_v54  ;;  %v774_v62 = vpop.eup %773  ;;  %v454_v4 = vxor.u32 2147483648, %v772_v58 }
  0x8d   : > { %v451_v8 = vxor.u32 2147483648, %v774_v62 }
  0x8e   : > { %691 = vst [vmem:[%s1010_s26 + $0x18] sm:$0x77] %v344_v0  ;;  %692 = vst [vmem:[%s1010_s26 + $0x20] sm:$0x77] %v347_v57  ;;  %v348_v59 = vmul.f32 2.0, %v344_v0  ;;  %v350_v60 = vsub.f32 %v347_v57, %v344_v0  ;;  %v351_v61 = vadd.f32 %v347_v57, %v344_v0  ;;  %v455_v9 = vsel %vm453_vm10, %v454_v4, %v774_v62 }
  0x8f   : > { %v558_v10 = vsel %vm556_vm9, %v454_v4, %v774_v62  ;;  %v452_v11 = vsel %vm450_vm11, %v772_v58, %v451_v8  ;;  %v555_v12 = vsel %vm553_vm13, %v772_v58, %v451_v8 }
  0x90   : > { %v349_v5 = vmul.f32 %v348_v59, %v347_v57  ;;  %v352_v7 = vmul.f32 %v351_v61, %v350_v60  ;;  %v456_v14 = vsel %vm449_vm14, %v452_v11, %v455_v9  ;;  %v559_v15 = vsel %vm552_vm12, %v555_v12, %v558_v10 }
  0x91   : > { %v457_v63 = vsel %vm446_vm15, nan, %v456_v14  ;;  %v560_v3 = vsel %vm446_vm15, nan, %v559_v15 }
  0x92   : > { %693 = vst [vmem:[%s1010_s26 + $0x28] sm:$0x77] %v349_v5  ;;  %694 = vst [vmem:[%s1010_s26 + $0x30] sm:$0x77] %v352_v7 }
  0x93   : > { %695 = vst [vmem:[%s1010_s26 + $0x38] sm:$0x77] %v457_v63  ;;  %696 = vst [vmem:[%s1010_s26 + $0x40] sm:$0x77] %v560_v3 }
  0x94   : > { %818 = shalt.err (!%p815_p3)
}
  0x95   : > { %s819_s11 = scalar_lea.hbm %s1094_s29, 1152  ;;  %s823_s16 = scalar_lea.hbm %s1141_s1, 9216 }
  0x96   : > { %p820_p5 = scmp.ne.s32.totalorder %s1094_s29, %s819_s11  ;;  %p824_p13 = scmp.lt.u32.totalorder %s1094_s29, %s1141_s1 }
  0x97   : > { %p825_p0 = scmp.lt.u32.totalorder %s823_s16, %s819_s11  ;;  %p827_p6 = scmp.lt.u32.totalorder %s819_s11, %s1094_s29 }
  0x98   : > { %p821_p7 = pnand %p820_p5, %p1150_p10 }
  0x99   : > { %p826_p2 = por %p825_p0, %p824_p13 }
  0x9a   : > { %p822_p8 = pneg %p821_p7 }
  0x9b   : > { %p828_p11 = por %p827_p6, %p826_p2 }
  0x9d   : > { %p829_p12 = pnand %p828_p11, %p822_p8 }
  0x9f   : > { %832 = shalt.err (!%p829_p12)
}
  0xa0   : > { %s881_s23 = smov 128   ;;  %s882_s24 = smov 1024  }
  0xa1   : > { %s883_s25 = smov 8  }
  0xa2   : > { %714 = dma.vmem_to_hbm [thread:$0]  (%p1150_p10), %s1085_s17, 1152, %s1094_s29, %s579_s30, %s881_s23, %s882_s24, %s883_s25  }
  0xa3 PF: > { %p725_p4 = scmp.ge.s32.totalorder %s871_s9, 2  ;;  %s607_s26 = sand.u32 1, %s859_s6  }
  0xa4   : > { %p1151_p9 = scmp.ne.s32.totalorder %s1146_s19, 0  ;;  %s608_s27 = scalar_lea.sflag [#allocation4], %s607_s26 }
  0xa6   : > { %p721_p1 = pnand %p725_p4, %p1151_p9 }
  0xa8   : > { %854 = dma.done.wait (!%p721_p1), %s608_s27, 1152  }
  0xa9   : > { %856 = vsyncadd (!%p721_p1), %s608_s27, 4294966144  ;;  %p14_p3 = scmp.ge.s32.totalorder %s919_s12, 10   ;;  %s1152_s6 = smov %s863_s7 }
  0xaa   : > { %s1153_s7 = smov %s867_s8  ;;  %s1154_s8 = smov %s931_s15 }
  0xab   : > { %s1155_s9 = smov %s919_s12  ;;  %16 = sbr.rel (!%p14_p3) target bundleno = 5 (0x5), region = 77 }
  0xb2   :  { %613 = vsyncpa [#allocation3], 1 }
  0xb3   :  { %615 = vsyncpa [#allocation3 + $0x1], 1 }
  0xb4   :  { %616 = vsyncpa [#allocation4], 1 }
  0xb5   :  { %618 = vsyncpa [#allocation4 + $0x1], 1 }

</bundles_post_ra>
